<compile_context>
chip_gen: v7x
topology: tpu7x:2x2x1
jax: 0.10.0
libtpu: 0.0.40
codegen_flags: <defaults>
</compile_context>

<pallas_src>
import math

import jax
import jax.numpy as jnp
from jax import lax
from jax.experimental import pallas as pl
from jax.experimental.pallas import tpu as pltpu


def _make_dwconv_kernel(H, W):
    def dwconv_kernel(x_ref, w_ref, b_ref, out_ref):
        # x_ref:   (1, H, W, CT)  input tile, channels on lanes
        # w_ref:   (3, 3, CT)     score-mixed depthwise weights
        # b_ref:   (1, CT)        score-mixed bias
        # out_ref: (1, H, W, CT)
        CT = x_ref.shape[-1]
        f32 = jnp.float32

        x = x_ref[0].astype(f32)                          # (H, W, CT) aligned load
        w = w_ref[...].astype(f32)                        # (3, 3, CT)
        b = b_ref[...].astype(f32).reshape(1, 1, CT)      # (1, 1, CT)

        # W-shifted neighbour views via XLU sublane rotates; the single wrapped
        # border column of each view is zeroed (this is the zero conv halo
        # along W).  Mask is (1, W, CT) and broadcasts along the leading H dim.
        col = lax.broadcasted_iota(jnp.int32, (W, CT), 0)[None]          # (1, W, CT)
        xl = jnp.where(col >= 1, pltpu.roll(x, shift=1, axis=1), 0.0)      # x[:, w-1]
        xr = jnp.where(col <= W - 2, pltpu.roll(x, shift=W - 1, axis=1), 0.0)  # x[:, w+1]

        def band(kh):
            # Input row i convolved along W with weight row kh (per-lane MACs).
            return xl * w[kh, 0] + x * w[kh, 1] + xr * w[kh, 2]

        # out[h] = band0[h-1] + band1[h] + band2[h+1]; rows outside [0, H) are
        # the zero conv halo along H.  H is a leading (untiled) dim, so the
        # row shifts are plain slices plus one zero row - no realignment.
        acc = band(1) + b                                  # seed with bias
        if H > 1:
            zrow = jnp.zeros((1, W, CT), f32)
            acc = acc + jnp.concatenate([zrow, band(0)[: H - 1]], axis=0)
            acc = acc + jnp.concatenate([band(2)[1:], zrow], axis=0)

        out_ref[0] = acc.astype(out_ref.dtype)

    return dwconv_kernel


def _spatial_shape(N):
    if N == 4800:
        return 60, 80
    H = W = int(math.isqrt(N))
    if H * W != N:
        raise ValueError(f"N={N} is not a perfect square (and not the 4800 case)")
    return H, W


def dwconv_forward(x, score, weight, cross_weight, bias, cross_bias):
    """x: (B, N, C); score: scalar; weight/cross_weight: (C,1,3,3);
    bias/cross_bias: (C,).  Returns (B, N, C)."""
    B, N, C = x.shape
    H, W = _spatial_shape(N)

    # Channel tile: 128 lanes when possible, otherwise the full channel dim
    # (block last dim must be a multiple of 128 or equal the full array dim).
    CT = 128 if (C % 128 == 0) else C
    n_ct = C // CT

    # (B, N, C) -> (B, H, W, C) is element-for-element the memory order of
    # torch's transpose(1,2).view(B,C,H,W) followed by NCHW->NHWC: a free
    # reshape, no transpose / pad passes through HBM.
    x_nhwc = x.reshape(B, H, W, C)

    # Pre-mix weights / bias once in the wrapper (tiny tensors).
    s = jnp.asarray(score, jnp.float32)
    w_mix = s * weight + (1.0 - s) * cross_weight             # (C, 1, 3, 3)
    w_mix = jnp.transpose(w_mix[:, 0], (1, 2, 0))             # (3, 3, C)
    b_mix = (s * bias + (1.0 - s) * cross_bias).reshape(1, C)

    kernel = _make_dwconv_kernel(H, W)

    out_nhwc = pl.pallas_call(
        kernel,
        out_shape=jax.ShapeDtypeStruct((B, H, W, C), x.dtype),
        grid_spec=pltpu.PrefetchScalarGridSpec(
            num_scalar_prefetch=0,
            grid=(B, n_ct),
            in_specs=[
                pl.BlockSpec((1, H, W, CT), lambda b, c: (b, 0, 0, c)),  # x tile
                pl.BlockSpec((3, 3, CT), lambda b, c: (0, 0, c)),        # weights
                pl.BlockSpec((1, CT), lambda b, c: (0, c)),              # bias
            ],
            out_specs=pl.BlockSpec((1, H, W, CT), lambda b, c: (b, 0, 0, c)),
        ),
        compiler_params=pltpu.CompilerParams(
            dimension_semantics=("parallel", "parallel"),
            vmem_limit_bytes=48 * 1024 * 1024),
    )(x_nhwc, w_mix, b_mix)

    # (B, H, W, C) -> (B, N, C): same memory order as torch's
    # flatten(2).transpose(1,2); again a free reshape.
    return out_nhwc.reshape(B, N, C)


def _reference(x, score, weight, cross_weight, bias, cross_bias):
    """Pure-JAX reference using lax.conv (mirrors torch F.conv2d semantics)."""
    B, N, C = x.shape
    H, W = _spatial_shape(N)
    x_nchw = jnp.transpose(x, (0, 2, 1)).reshape(B, C, H, W)
    w_mix = score * weight + (1.0 - score) * cross_weight    # (C,1,3,3)
    b_mix = score * bias + (1.0 - score) * cross_bias        # (C,)
    y = lax.conv_general_dilated(
        x_nchw, w_mix, window_strides=(1, 1), padding=((1, 1), (1, 1)),
        feature_group_count=C,
        dimension_numbers=("NCHW", "OIHW", "NCHW"))
    y = y + b_mix[None, :, None, None]
    return jnp.transpose(y.reshape(B, C, H * W), (0, 2, 1))


if __name__ == "__main__":
    key = jax.random.PRNGKey(0)
    B, C = 2, 256          # C=256 exercises the channel-tile grid (2 x 128)
    H = W = 8
    N = H * W              # square spatial grid

    k1, k2, k3, k4, k5 = jax.random.split(key, 5)
    x = jax.random.normal(k1, (B, N, C), dtype=jnp.float32)
    weight = jax.random.normal(k2, (C, 1, 3, 3), dtype=jnp.float32) * 0.1
    cross_weight = jax.random.normal(k3, (C, 1, 3, 3), dtype=jnp.float32) * 0.1
    bias = jax.random.normal(k4, (C,), dtype=jnp.float32) * 0.1
    cross_bias = jax.random.normal(k5, (C,), dtype=jnp.float32) * 0.1
    score = jnp.float32(0.3)

    out = dwconv_forward(x, score, weight, cross_weight, bias, cross_bias)
    out = jax.block_until_ready(out)

    ref = _reference(x, score, weight, cross_weight, bias, cross_bias)
    assert out.shape == (B, N, C)
    assert jnp.allclose(out, ref, atol=1e-5, rtol=1e-5), "mismatch vs reference"
    print("KERNEL_OK")
</pallas_src>

<mosaic_0001>
module attributes {stable_mosaic.version = 11 : i64} {
  func.func @dwconv_kernel(%arg0: i32, %arg1: i32, %arg2: memref<1x8x8x128xf32, #tpu.memory_space<vmem>>, %arg3: memref<3x3x128xf32, #tpu.memory_space<vmem>>, %arg4: memref<1x128xf32, #tpu.memory_space<vmem>>, %arg5: memref<1x8x8x128xf32, #tpu.memory_space<vmem>>) attributes {dimension_semantics = [#tpu.dimension_semantics<parallel>, #tpu.dimension_semantics<parallel>], iteration_bounds = array<i64: 2, 2>, scalar_prefetch = 0 : i64, scratch_operands = 0 : i64, tpu.core_type = #tpu.core_type<tc>, window_params = [{transform_indices = @transform_0, window_bounds = array<i64: 1, 8, 8, 128>}, {transform_indices = @transform_1, window_bounds = array<i64: 3, 3, 128>}, {transform_indices = @transform_2, window_bounds = array<i64: 1, 128>}, {transform_indices = @transform_3, window_bounds = array<i64: 1, 8, 8, 128>}]} {
    %c0 = arith.constant 0 : index
    %c0_0 = arith.constant 0 : index
    %c0_1 = arith.constant 0 : index
    %c0_2 = arith.constant 0 : index
    %0 = vector.load %arg2[%c0, %c0_0, %c0_1, %c0_2] : memref<1x8x8x128xf32, #tpu.memory_space<vmem>>, vector<1x8x8x128xf32>
    %1 = vector.shape_cast %0 : vector<1x8x8x128xf32> to vector<8x8x128xf32>
    %c0_3 = arith.constant 0 : index
    %c0_4 = arith.constant 0 : index
    %c0_5 = arith.constant 0 : index
    %2 = vector.load %arg3[%c0_3, %c0_4, %c0_5] : memref<3x3x128xf32, #tpu.memory_space<vmem>>, vector<3x3x128xf32>
    %c0_6 = arith.constant 0 : index
    %c0_7 = arith.constant 0 : index
    %3 = vector.load %arg4[%c0_6, %c0_7] : memref<1x128xf32, #tpu.memory_space<vmem>>, vector<1x128xf32>
    %4 = vector.shape_cast %3 : vector<1x128xf32> to vector<1x1x128xf32>
    %5 = tpu.iota {dimensions = array<i32: 0>} : vector<8x128xi32>
    %6 = vector.shape_cast %5 : vector<8x128xi32> to vector<1x8x128xi32>
    %c1_i32 = arith.constant 1 : i32
    %7 = vector.broadcast %c1_i32 : i32 to vector<1x8x128xi32>
    %8 = arith.cmpi sge, %6, %7 : vector<1x8x128xi32>
    %c1_i32_8 = arith.constant 1 : i32
    %9 = tpu.dynamic_rotate %1 by %c1_i32_8 dim 1 : vector<8x8x128xf32>, i32 -> vector<8x8x128xf32>
    %cst = arith.constant 0.000000e+00 : f32
    %10 = vector.shape_cast %8 : vector<1x8x128xi1> to vector<1x8x128xi1>
    %11 = vector.broadcast %10 : vector<1x8x128xi1> to vector<8x8x128xi1>
    %12 = vector.broadcast %cst : f32 to vector<8x8x128xf32>
    %13 = arith.select %11, %9, %12 : vector<8x8x128xi1>, vector<8x8x128xf32>
    %c6_i32 = arith.constant 6 : i32
    %14 = vector.broadcast %c6_i32 : i32 to vector<1x8x128xi32>
    %15 = arith.cmpi sle, %6, %14 : vector<1x8x128xi32>
    %c7_i32 = arith.constant 7 : i32
    %16 = tpu.dynamic_rotate %1 by %c7_i32 dim 1 : vector<8x8x128xf32>, i32 -> vector<8x8x128xf32>
    %cst_9 = arith.constant 0.000000e+00 : f32
    %17 = vector.shape_cast %15 : vector<1x8x128xi1> to vector<1x8x128xi1>
    %18 = vector.broadcast %17 : vector<1x8x128xi1> to vector<8x8x128xi1>
    %19 = vector.broadcast %cst_9 : f32 to vector<8x8x128xf32>
    %20 = arith.select %18, %16, %19 : vector<8x8x128xi1>, vector<8x8x128xf32>
    %21 = vector.extract_strided_slice %2 {offsets = [1, 0, 0], sizes = [1, 1, 128], strides = [1, 1, 1]} : vector<3x3x128xf32> to vector<1x1x128xf32>
    %22 = vector.shape_cast %21 : vector<1x1x128xf32> to vector<128xf32>
    %23 = vector.shape_cast %22 : vector<128xf32> to vector<1x1x128xf32>
    %24 = vector.broadcast %23 : vector<1x1x128xf32> to vector<8x8x128xf32>
    %25 = arith.mulf %13, %24 : vector<8x8x128xf32>
    %26 = vector.extract_strided_slice %2 {offsets = [1, 1, 0], sizes = [1, 1, 128], strides = [1, 1, 1]} : vector<3x3x128xf32> to vector<1x1x128xf32>
    %27 = vector.shape_cast %26 : vector<1x1x128xf32> to vector<128xf32>
    %28 = vector.shape_cast %27 : vector<128xf32> to vector<1x1x128xf32>
    %29 = vector.broadcast %28 : vector<1x1x128xf32> to vector<8x8x128xf32>
    %30 = arith.mulf %1, %29 : vector<8x8x128xf32>
    %31 = arith.addf %25, %30 : vector<8x8x128xf32>
    %32 = vector.extract_strided_slice %2 {offsets = [1, 2, 0], sizes = [1, 1, 128], strides = [1, 1, 1]} : vector<3x3x128xf32> to vector<1x1x128xf32>
    %33 = vector.shape_cast %32 : vector<1x1x128xf32> to vector<128xf32>
    %34 = vector.shape_cast %33 : vector<128xf32> to vector<1x1x128xf32>
    %35 = vector.broadcast %34 : vector<1x1x128xf32> to vector<8x8x128xf32>
    %36 = arith.mulf %20, %35 : vector<8x8x128xf32>
    %37 = arith.addf %31, %36 : vector<8x8x128xf32>
    %38 = vector.broadcast %4 : vector<1x1x128xf32> to vector<8x8x128xf32>
    %39 = arith.addf %37, %38 : vector<8x8x128xf32>
    %cst_10 = arith.constant 0.000000e+00 : f32
    %40 = vector.broadcast %cst_10 : f32 to vector<1x8x128xf32>
    %41 = vector.extract_strided_slice %2 {offsets = [0, 0, 0], sizes = [1, 1, 128], strides = [1, 1, 1]} : vector<3x3x128xf32> to vector<1x1x128xf32>
    %42 = vector.shape_cast %41 : vector<1x1x128xf32> to vector<128xf32>
    %43 = vector.shape_cast %42 : vector<128xf32> to vector<1x1x128xf32>
    %44 = vector.broadcast %43 : vector<1x1x128xf32> to vector<8x8x128xf32>
    %45 = arith.mulf %13, %44 : vector<8x8x128xf32>
    %46 = vector.extract_strided_slice %2 {offsets = [0, 1, 0], sizes = [1, 1, 128], strides = [1, 1, 1]} : vector<3x3x128xf32> to vector<1x1x128xf32>
    %47 = vector.shape_cast %46 : vector<1x1x128xf32> to vector<128xf32>
    %48 = vector.shape_cast %47 : vector<128xf32> to vector<1x1x128xf32>
    %49 = vector.broadcast %48 : vector<1x1x128xf32> to vector<8x8x128xf32>
    %50 = arith.mulf %1, %49 : vector<8x8x128xf32>
    %51 = arith.addf %45, %50 : vector<8x8x128xf32>
    %52 = vector.extract_strided_slice %2 {offsets = [0, 2, 0], sizes = [1, 1, 128], strides = [1, 1, 1]} : vector<3x3x128xf32> to vector<1x1x128xf32>
    %53 = vector.shape_cast %52 : vector<1x1x128xf32> to vector<128xf32>
    %54 = vector.shape_cast %53 : vector<128xf32> to vector<1x1x128xf32>
    %55 = vector.broadcast %54 : vector<1x1x128xf32> to vector<8x8x128xf32>
    %56 = arith.mulf %20, %55 : vector<8x8x128xf32>
    %57 = arith.addf %51, %56 : vector<8x8x128xf32>
    %58 = vector.extract_strided_slice %57 {offsets = [0, 0, 0], sizes = [7, 8, 128], strides = [1, 1, 1]} : vector<8x8x128xf32> to vector<7x8x128xf32>
    %59 = tpu.concatenate %40, %58 in 0 : vector<1x8x128xf32>, vector<7x8x128xf32> -> vector<8x8x128xf32>
    %60 = arith.addf %39, %59 : vector<8x8x128xf32>
    %61 = vector.extract_strided_slice %2 {offsets = [2, 0, 0], sizes = [1, 1, 128], strides = [1, 1, 1]} : vector<3x3x128xf32> to vector<1x1x128xf32>
    %62 = vector.shape_cast %61 : vector<1x1x128xf32> to vector<128xf32>
    %63 = vector.shape_cast %62 : vector<128xf32> to vector<1x1x128xf32>
    %64 = vector.broadcast %63 : vector<1x1x128xf32> to vector<8x8x128xf32>
    %65 = arith.mulf %13, %64 : vector<8x8x128xf32>
    %66 = vector.extract_strided_slice %2 {offsets = [2, 1, 0], sizes = [1, 1, 128], strides = [1, 1, 1]} : vector<3x3x128xf32> to vector<1x1x128xf32>
    %67 = vector.shape_cast %66 : vector<1x1x128xf32> to vector<128xf32>
    %68 = vector.shape_cast %67 : vector<128xf32> to vector<1x1x128xf32>
    %69 = vector.broadcast %68 : vector<1x1x128xf32> to vector<8x8x128xf32>
    %70 = arith.mulf %1, %69 : vector<8x8x128xf32>
    %71 = arith.addf %65, %70 : vector<8x8x128xf32>
    %72 = vector.extract_strided_slice %2 {offsets = [2, 2, 0], sizes = [1, 1, 128], strides = [1, 1, 1]} : vector<3x3x128xf32> to vector<1x1x128xf32>
    %73 = vector.shape_cast %72 : vector<1x1x128xf32> to vector<128xf32>
    %74 = vector.shape_cast %73 : vector<128xf32> to vector<1x1x128xf32>
    %75 = vector.broadcast %74 : vector<1x1x128xf32> to vector<8x8x128xf32>
    %76 = arith.mulf %20, %75 : vector<8x8x128xf32>
    %77 = arith.addf %71, %76 : vector<8x8x128xf32>
    %78 = vector.extract_strided_slice %77 {offsets = [1, 0, 0], sizes = [7, 8, 128], strides = [1, 1, 1]} : vector<8x8x128xf32> to vector<7x8x128xf32>
    %79 = tpu.concatenate %78, %40 in 0 : vector<7x8x128xf32>, vector<1x8x128xf32> -> vector<8x8x128xf32>
    %80 = arith.addf %60, %79 : vector<8x8x128xf32>
    %c0_11 = arith.constant 0 : index
    %c0_12 = arith.constant 0 : index
    %c0_13 = arith.constant 0 : index
    %c0_14 = arith.constant 0 : index
    %81 = vector.load %arg5[%c0_11, %c0_12, %c0_13, %c0_14] : memref<1x8x8x128xf32, #tpu.memory_space<vmem>>, vector<1x8x8x128xf32>
    %82 = vector.shape_cast %81 : vector<1x8x8x128xf32> to vector<8x8x128xf32>
    %83 = vector.shape_cast %80 : vector<8x8x128xf32> to vector<1x8x8x128xf32>
    tpu.vector_store %arg5[%c0_11, %c0_12, %c0_13, %c0_14], %83 {strides = array<i32>} : memref<1x8x8x128xf32, #tpu.memory_space<vmem>>, vector<1x8x8x128xf32>,
    return
  }
  func.func @transform_0(%arg0: i32, %arg1: i32) -> (i32, i32, i32, i32) {
    %c0_i32 = arith.constant 0 : i32
    %c0_i32_0 = arith.constant 0 : i32
    %c0_i32_1 = arith.constant 0 : i32
    return %arg0, %c0_i32, %c0_i32_0, %arg1 : i32, i32, i32, i32
  }
  func.func @transform_1(%arg0: i32, %arg1: i32) -> (i32, i32, i32) {
    %c0_i32 = arith.constant 0 : i32
    %c0_i32_0 = arith.constant 0 : i32
    %c0_i32_1 = arith.constant 0 : i32
    return %c0_i32, %c0_i32_0, %arg1 : i32, i32, i32
  }
  func.func @transform_2(%arg0: i32, %arg1: i32) -> (i32, i32) {
    %c0_i32 = arith.constant 0 : i32
    %c0_i32_0 = arith.constant 0 : i32
    return %c0_i32, %arg1 : i32, i32
  }
  func.func @transform_3(%arg0: i32, %arg1: i32) -> (i32, i32, i32, i32) {
    %c0_i32 = arith.constant 0 : i32
    %c0_i32_0 = arith.constant 0 : i32
    %c0_i32_1 = arith.constant 0 : i32
    return %arg0, %c0_i32, %c0_i32_0, %arg1 : i32, i32, i32, i32
  }
}

</mosaic_0001>

<bundles_post_ra>
// kernel: tpu_custom_call.1
= control target key start
LH: loop header
LB: loop body
LE: loop exit
PB: predicated region body
PF: predicated region fallthrough
CT: control target
= control target key end

     0   :  { %s1511_s0 = inlined_call_operand.hbm [shape: f32[2,8,8,256], index: 0, kind: input, shape index: {}]   ;;  %s1512_s1 = inlined_call_operand.hbm [shape: f32[3,3,256], index: 1, kind: input, shape index: {}]   ;;  %s1513_s2 = inlined_call_operand.vmem [shape: f32[1,256], index: 2, kind: input, shape index: {}]   ;;  %s1514_s3 = inlined_call_operand.hbm [shape: f32[2,8,8,256], index: 3, kind: output, shape index: {}]  }
   0x1   :  { %1525 = sst [smem:[#allocation15_spill]] %s1514_s3 }
   0x2   :  { %8 = vsyncpa [#allocation3], 0 }
   0x3   :  { %10 = vsyncpa [#allocation3 + $0x1], 0 }
   0x4   :  { %11 = vsyncpa [#allocation6], 0 }
   0x5   :  { %13 = vsyncpa [#allocation6 + $0x1], 0 }
   0x6   :  { %14 = vsyncpa [#allocation4], 0 }
   0x7   :  { %16 = vsyncpa [#allocation4 + $0x1], 0  ;;  %s983_s12 = smov 0   ;;  %s985_s13 = smov 0  }
   0x8   :  { %s987_s14 = smov 0   ;;  %s989_s15 = smov 0  }
   0x9   :  { %s991_s16 = smov 0   ;;  %s993_s17 = smov 0  }
   0xa   :  { %s995_s18 = smov 0   ;;  %s997_s19 = smov 0  }
   0xb   :  { %s999_s20 = smov 0   ;;  %s1001_s21 = smov 0  }
   0xc   :  { %s1003_s22 = smov 0  }
   0xd LB: > { %1526 = sst [smem:[#allocation11_spill]] %s922_s15  ;;  %s630_s23 = sadd.s32 4294967295, %s950_s22   ;;  %s950_s22 = sphi %s1003_s22, %s22_s22   ;;  %s946_s21 = sphi %s1001_s21, %s1562_s21   ;;  %s942_s20 = sphi %s999_s20, %s1561_s20   ;;  %s938_s19 = sphi %s997_s19, %s1560_s19   ;;  %s934_s18 = sphi %s995_s18, %s1559_s18   ;;  %s930_s17 = sphi %s993_s17, %s1558_s17   ;;  %s926_s16 = sphi %s991_s16, %s1557_s16   ;;  %s922_s15 = sphi %s989_s15, %s1556_s15   ;;  %s918_s14 = sphi %s987_s14, %s1555_s14   ;;  %s914_s13 = sphi %s985_s13, %s1554_s13   ;;  %s910_s12 = sphi %s983_s12, %s1553_s12  }
   0xe   : > { %1527 = sst [smem:[#allocation12_spill]] %s938_s19  ;;  %s631_s24 = sadd.s32 4294967294, %s950_s22  }
   0xf   : > { %s31_s25 = sadd.s32 1, %s942_s20  ;;  %s34_s26 = sadd.s32 1, %s946_s21 }
  0x10   : > { %p32_p0 = scmp.ge.s32.totalorder %s31_s25, 2  ;;  %s43_s27 = sadd.s32 1, %s930_s17 }
  0x11   : > { %p50_p1 = scmp.ne.s32.totalorder %s930_s17, %s926_s16  ;;  %p1520_p2 = scmp.eq.s32.totalorder %s950_s22, 0 }
  0x12   : > { %s1564_s25 = smov (%p32_p0, %s31_s25), 0  ;;  %s1566_s26 = smov (!%p32_p0, %s34_s26), %s946_s21 }
  0x13   : > { %1528 = sst [smem:[#allocation13_spill]] %s1564_s25  ;;  %s1051_s28 = ssub.s32 %s942_s20, %s1564_s25 }
  0x14   : > { %p1058_p3 = por %p1520_p2, %p50_p1  ;;  %p36_p4 = scmp.ge.s32.totalorder %s1566_s26, 2 }
  0x15   : > { %p56_p5 = scmp.ne.s32.totalorder %s926_s16, %s922_s15  ;;  %p1064_p6 = scmp.eq.s32.totalorder %s630_s23, 0 }
  0x16   : > { %s1568_s26 = smov (%p36_p4, %s1566_s26), 0  ;;  %p134_p9 = scmp.eq.s32.totalorder %s630_s23, 3 }
  0x17   : > { %1531 = sst [smem:[#allocation14_spill]] %s1568_s26  ;;  %p1073_p8 = por %p1064_p6, %p56_p5 }
  0x18   : > { %s38_s5 = ssub.s32 %s946_s21, %s1568_s26  ;;  %p140_p10 = scmp.eq.s32.totalorder %s631_s24, 3 }
  0x19   : > { %s1532_s4 = scalar_select %p1073_p8, 1, 0 }
  0x1a   : > { %s40_s6 = sor.u32 %s1051_s28, %s38_s5  ;;  %p1083_p11 = por %p134_p9, %p50_p1 }
  0x1b   : > { %p41_p12 = scmp.eq.s32.totalorder %s40_s6, 0  ;;  %p1087_p13 = por %p140_p10, %p56_p5 }
  0x1c   : > { %s1533_s7 = scalar_select %p1083_p11, 1, 0 }
  0x1d   : > { %s1534_s8 = scalar_select %p1087_p13, 1, 0 }
  0x1e   : > { %p1519_p0 = scmp.lt.s32.totalorder %s950_s22, 4  ;;  %s160_s10 = sand.u32 1, %s930_s17  }
  0x1f   : > { %s1093_s9 = scalar_select %p41_p12, %s930_s17, %s43_s27  }
  0x20   : > { %s635_s11 = sshll.u32 %s946_s21, 4  ;;  %s634_s23 = sshll.u32 %s160_s10, 6 }
  0x21   : > { %s169_s24 = sadd.s32 %s942_s20, %s635_s11  ;;  %s164_s5 = scalar_lea.vmem [#allocation2], %s634_s23 }
  0x22   : > { %s636_s26 = sshll.u32 %s169_s24, 7  ;;  %s172_s25 = sshll.u32 %s164_s5, 4  ;;  %s1103_s25 = int_to_ptr.vmem [resolvable:$true] %s172_s25 }
  0x23   : > { %s1101_s19 = scalar_lea.hbm %s1511_s0, %s636_s26  ;;  %p1109_p1 = pnand %p1519_p0, %p1058_p3 }
  0x24   : > { %s1114_s6 = scalar_lea.sflag [#allocation3], %s160_s10  ;;  %s764_s3 = scalar_lea.hbm %s1101_s19, 1024 }
  0x25   : > { %p765_p5 = scmp.ne.s32.totalorder %s1101_s19, %s764_s3  ;;  %p766_p9 = pneg %p1109_p1 }
  0x26   : > { %s769_s29 = scalar_lea.hbm %s1511_s0, 4096  ;;  %p770_p3 = scmp.lt.u32.totalorder %s1101_s19, %s1511_s0 }
  0x27   : > { %p767_p10 = pnand %p766_p9, %p765_p5  ;;  %p771_p0 = scmp.lt.u32.totalorder %s769_s29, %s764_s3 }
  0x28   : > { %p773_p7 = scmp.lt.u32.totalorder %s764_s3, %s1101_s19 }
  0x29   : > { %p768_p12 = pneg %p767_p10  ;;  %p772_p2 = por %p771_p0, %p770_p3 }
  0x2b   : > { %p774_p4 = por %p773_p7, %p772_p2 }
  0x2d   : > { %p775_p13 = pnand %p774_p4, %p768_p12 }
  0x2f   : > { %778 = shalt.err (!%p775_p13)
}
  0x30   : > { %s779_s10 = scalar_lea.vmem %s1103_s25, 1024  ;;  %s952_s24 = smov [#allocation2]  }
  0x31   : > { %p780_p5 = scmp.ne.s32.totalorder %s1103_s25, %s779_s10  ;;  %s784_s5 = sshll.u32 %s952_s24, 4  ;;  %s785_s5 = int_to_ptr.vmem [resolvable:$false] %s784_s5 }
  0x32   : > { %s786_s15 = scalar_lea.vmem %s785_s5, 2048  ;;  %p787_p8 = scmp.lt.s32.totalorder %s1103_s25, %s785_s5 }
  0x33   : > { %p782_p10 = pnand %p780_p5, %p766_p9  ;;  %p788_p0 = scmp.lt.s32.totalorder %s786_s15, %s779_s10 }
  0x35   : > { %p783_p11 = pneg %p782_p10  ;;  %p789_p3 = por %p788_p0, %p787_p8 }
  0x37   : > { %p790_p2 = pnand %p789_p3, %p783_p11 }
  0x39   : > { %793 = shalt.err (!%p790_p2)
}
  0x3a   : > { %s953_s3 = smov 256   ;;  %s1523_s26 = smov 128  }
  0x3b   : > { %s955_s29 = smov 8   ;;  %p206_p7 = scmp.lt.s32.totalorder %s950_s22, 5 }
  0x3c   : > { %658 = dma.hbm_to_vmem [thread:$0]  (!%p1109_p1), %s1101_s19, 1024, %s1103_s25, %s1114_s6, %s953_s3, %s1523_s26, %s955_s29  }
  0x3d   : > { %p1536_p8 = scmp.ge.s32.totalorder %s950_s22, 1  ;;  %s69_s23 = sadd.s32 1, %s918_s14 }
  0x3e   : > { %p76_p13 = scmp.ne.s32.totalorder %s918_s14, %s914_s13  ;;  %p1538_p4 = scmp.eq.s32.totalorder %s1051_s28, 0 }
  0x3f   : > { %p1146_p11 = pnand %p1536_p8, %p206_p7  ;;  %p1539_p9 = scmp.eq.s32.totalorder %s950_s22, 0 }
  0x40   : > { %s1156_s10 = scalar_select %p1538_p4, %s918_s14, %s69_s23  }
  0x41   : > { %p78_p12 = por %p76_p13, %p1539_p9  ;;  %p82_p5 = scmp.ne.s32.totalorder %s914_s13, %s910_s12 }
  0x42   : > { %s182_s24 = sand.u32 1, %s918_s14   ;;  %s637_s5 = sshll.u32 %s942_s20, 6 }
  0x43   : > { %p1166_p10 = por %p82_p5, %p1064_p6  ;;  %s647_s19 = smul.u32 12, %s182_s24 }
  0x44   : > { %s1173_s15 = scalar_lea.hbm %s1512_s1, %s637_s5  ;;  %p1541_p1 = scmp.lt.s32.totalorder %s950_s22, 4 }
  0x45   : > { %s1540_s27 = scalar_select %p1166_p10, 1, 0 }
  0x46   : > { %p1177_p0 = pnand %p1541_p1, %p78_p12  ;;  %s186_s28 = scalar_lea.vmem [#allocation5], %s647_s19 }
  0x47   : > { %s192_s30 = sshll.u32 %s186_s28, 4  ;;  %s1183_s3 = scalar_lea.sflag [#allocation6], %s182_s24  ;;  %s1181_s30 = int_to_ptr.vmem [resolvable:$true] %s192_s30 }
  0x48   : > { %s794_s29 = scalar_lea.hbm %s1173_s15, 192  ;;  %p796_p3 = pneg %p1177_p0 }
  0x49   : > { %p795_p6 = scmp.ne.s32.totalorder %s1173_s15, %s794_s29  ;;  %s799_s25 = scalar_lea.hbm %s1512_s1, 384 }
  0x4a   : > { %p800_p8 = scmp.lt.u32.totalorder %s1173_s15, %s1512_s1  ;;  %p801_p13 = scmp.lt.u32.totalorder %s799_s25, %s794_s29 }
  0x4b   : > { %p797_p2 = pnand %p796_p3, %p795_p6  ;;  %p803_p9 = scmp.lt.u32.totalorder %s794_s29, %s1173_s15 }
  0x4c   : > { %p802_p4 = por %p801_p13, %p800_p8 }
  0x4d   : > { %p798_p7 = pneg %p797_p2 }
  0x4e   : > { %p804_p12 = por %p803_p9, %p802_p4 }
  0x50   : > { %p805_p5 = pnand %p804_p12, %p798_p7 }
  0x52   : > { %808 = shalt.err (!%p805_p5)
}
  0x53   : > { %s809_s24 = scalar_lea.vmem %s1181_s30, 192  ;;  %s956_s19 = smov [#allocation5]  }
  0x54   : > { %p810_p1 = scmp.ne.s32.totalorder %s1181_s30, %s809_s24  ;;  %s814_s28 = sshll.u32 %s956_s19, 4  ;;  %s815_s28 = int_to_ptr.vmem [resolvable:$false] %s814_s28 }
  0x55   : > { %s816_s26 = scalar_lea.vmem %s815_s28, 384  ;;  %p817_p10 = scmp.lt.s32.totalorder %s1181_s30, %s815_s28 }
  0x56   : > { %p812_p6 = pnand %p810_p1, %p796_p3  ;;  %p818_p8 = scmp.lt.s32.totalorder %s816_s26, %s809_s24 }
  0x58   : > { %p813_p2 = pneg %p812_p6  ;;  %p819_p13 = por %p818_p8, %p817_p10 }
  0x5a   : > { %p820_p4 = pnand %p819_p13, %p813_p2 }
  0x5c   : > { %823 = shalt.err (!%p820_p4)
}
  0x5d   : > { %s957_s29 = smov 64   ;;  %s958_s23 = smov 4  }
  0x5e   : > { %s1543_s5 = smov 128   ;;  %210 = sbr.rel (%p1146_p11) target bundleno = 175 (0xaf), region = 32 }
  0x5f   : > { %661 = dma.hbm_to_vmem [thread:$0]  (!%p1177_p0), %s1173_s15, 192, %s1181_s30, %s1183_s3, %s1543_s5, %s957_s29, %s958_s23  }
  0x60   : > { %s1215_s25 = sand.u32 (!%p1146_p11), 1, %s926_s16   ;;  %p1544_p10 = scmp.ne.s32.totalorder (!%p1146_p11), %s1532_s4, 0 }
  0x61   : > { %s639_s6 = sshll.u32 (!%p1146_p11), %s1215_s25, 6  ;;  %s213_s24 = scalar_lea.sflag (!%p1146_p11), [#allocation3], %s1215_s25 }
  0x62   : > { %s1221_s19 = scalar_lea.vmem (!%p1146_p11), [#allocation2], %s639_s6 }
  0x65   : > { %897 = dma.done.wait (%p1544_p10), %s213_s24, 1024  }
  0x66   : > { %899 = vsyncadd (%p1544_p10), %s213_s24, 4294966272  ;;  %s221_s11 = sand.u32 1, %s914_s13   ;;  %p1545_p11 = scmp.ne.s32.totalorder %s1540_s27, 0 }
  0x67   : > { %s648_s15 = smul.u32 12, %s221_s11  ;;  %s222_s12 = scalar_lea.sflag [#allocation6], %s221_s11 }
  0x69   : > { %s1228_s30 = scalar_lea.vmem [#allocation5], %s648_s15 }
  0x6a   : > { %901 = dma.done.wait (%p1545_p11), %s222_s12, 192  }
  0x6b   : > { %903 = vsyncadd (%p1545_p11), %s222_s12, 4294967104  ;;  %v271_v0 = vlaneseq  ;;  %p256_p0 = scmp.lt.s32.totalorder %s934_s18, 1  ;;  %v259_v5 = vld [vmem:[%s1221_s19] sm:$0xff]  ;;  %v1242_v6 = vld [vmem:[%s1221_s19 + $0x8] sm:$0xff]  ;;  %s1330_s26 = scalar_lea.vmem [#allocation7], %s639_s6 }
  0x6c   : > { %v268_v7 = vld [vmem:[%s1228_s30 + $0x4] sm:$0x7]  ;;  %v269_v8 = vld [vmem:[%s1228_s30 + $0x8] sm:$0x7]  ;;  %v274_v9 = vrot.slane %v259_v5, 7  ;;  %v275_v10 = vrot.slane %v1242_v6, 7 }
  0x6d   : > { %v1234_v1 = vshrl.u32 %v271_v0, 7  ;;  %s1254_s4 = scalar_select %p256_p0, %s934_s18, 1  ;;  %v293_v13 = vrot.slane %v259_v5, 1  ;;  %v294_v14 = vrot.slane %v1242_v6, 1  ;;  %v1262_v17 = vld [vmem:[%s1221_s19 + $0x10] sm:$0xff]  ;;  %v1301_v43 = vld [vmem:[%s1221_s19 + $0x18] sm:$0xff] }
  0x6e   : > { %v267_v29 = vld [vmem:[%s1228_s30] sm:$0x7]  ;;  %v276_v30 = vrot.slane %v1262_v17, 7  ;;  %v295_v32 = vrot.slane %v1262_v17, 1  ;;  %v277_v56 = vrot.slane %v1301_v43, 7  ;;  %v296_v60 = vrot.slane %v1301_v43, 1 }
  0x6f   : > { %v313_v2 = vsub.s32 0, %v1234_v1  ;;  %v325_v3 = vsub.s32 1, %v1234_v1  ;;  %v345_v4 = vsub.s32 2, %v1234_v1  ;;  %vm273_vm0 = vcmp.ge.s32.totalorder %v1234_v1, 1  ;;  %s258_s28 = scalar_lea.vmem %s1513_s2, %s1254_s4  ;;  %s1546_s29 = sld [smem:[#allocation12_spill]] }
  0x70   : > { %vm292_vm1 = vcmp.le.s32.totalorder %v1234_v1, 6  ;;  %v284_v18 = vsel %vm273_vm0, %v274_v9, 0.0  ;;  %v285_v19 = vsel %vm273_vm0, %v275_v10, 0.0  ;;  %v286_v37 = vsel %vm273_vm0, %v276_v30, 0.0  ;;  %v1303_v44 = vld [vmem:[%s258_s28] ss:$0 sm:$0xff] }
  0x71   : > { %v1249_v11 = vrot.slane %v268_v7, %v313_v2  ;;  %v1251_v12 = vrot.slane %v268_v7, %v325_v3  ;;  %v1257_v15 = vrot.slane %v268_v7, %v345_v4  ;;  %v1259_v16 = vrot.slane %v269_v8, %v313_v2  ;;  %s510_s6 = sshll.u32 %s1330_s26, 4  ;;  %s1547_s11 = sld [smem:[#allocation15_spill]]  ;;  %s1440_s6 = int_to_ptr.vmem [resolvable:$true] %s510_s6 }
  0x72   : > { %v1269_v21 = vrot.slane %v269_v8, %v325_v3  ;;  %v303_v22 = vsel %vm292_vm1, %v293_v13, 0.0  ;;  %v304_v23 = vsel %vm292_vm1, %v294_v14, 0.0  ;;  %v1280_v28 = vrot.slane %v269_v8, %v345_v4  ;;  %s496_s12 = scalar_lea.sflag [#allocation4], %s1215_s25  ;;  %s824_s30 = scalar_lea.vmem %s1440_s6, 1024 }
  0x73   : > { %v327_v20 = vmul.f32 %v1251_v12, %v259_v5  ;;  %v315_v24 = vmul.f32 %v1249_v11, %v284_v18  ;;  %v436_v25 = vmul.f32 %v1259_v16, %v285_v19  ;;  %v347_v26 = vmul.f32 %v1257_v15, %v303_v22  ;;  %p825_p3 = scmp.ne.s32.totalorder %s1440_s6, %s824_s30  ;;  %p1548_p7 = scmp.ne.s32.totalorder %s1533_s7, 0 }
  0x74   : > { %v447_v27 = vmul.f32 %v1269_v21, %v1242_v6  ;;  %v316_v33 = vmul.f32 %v1249_v11, %v285_v19  ;;  %v328_v34 = vmul.f32 %v1251_v12, %v1242_v6  ;;  %v465_v36 = vmul.f32 %v1280_v28, %v304_v23  ;;  %s959_s4 = smov [#allocation7]  }
  0x75   : > { %v335_v31 = vadd.f32 %v327_v20, %v315_v24  ;;  %v348_v38 = vmul.f32 %v1257_v15, %v304_v23  ;;  %v305_v40 = vsel %vm292_vm1, %v295_v32, 0.0  ;;  %v1298_v42 = vrot.slane %v267_v29, %v313_v2  ;;  %v1326_v2 = vld [vmem:[%s1221_s19 + $0x20] sm:$0xff]  ;;  %s643_s23 = sshll.u32 %s1546_s29, 4  ;;  %p826_p9 = pnand %p825_p3, %p1548_p7 }
  0x76   : > { %v454_v35 = vadd.f32 %v447_v27, %v436_v25  ;;  %v336_v41 = vadd.f32 %v328_v34, %v316_v33  ;;  %v1305_v46 = vrot.slane %v267_v29, %v325_v3  ;;  %v1307_v47 = vrot.slane %v267_v29, %v345_v4  ;;  %v1355_v34 = vld [vmem:[%s1221_s19 + $0x28] sm:$0xff]  ;;  %s507_s5 = sadd.s32 %s934_s18, %s643_s23  ;;  %s828_s27 = sshll.u32 %s959_s4, 4  ;;  %s829_s27 = int_to_ptr.vmem [resolvable:$false] %s828_s27 }
  0x77   : > { %v355_v39 = vadd.f32 %v347_v26, %v335_v31  ;;  %v437_v48 = vmul.f32 %v1259_v16, %v286_v37  ;;  %v381_v51 = vmul.f32 %v1298_v42, %v284_v18  ;;  %v448_v52 = vmul.f32 %v1269_v21, %v1262_v17  ;;  %s644_s18 = sshll.u32 %s507_s5, 7  ;;  %p827_p12 = pneg %p826_p9 }
  0x78   : > { %v472_v45 = vadd.f32 %v465_v36, %v454_v35  ;;  %v356_v50 = vadd.f32 %v348_v38, %v336_v41  ;;  %v392_v53 = vmul.f32 %v1305_v46, %v259_v5  ;;  %v410_v54 = vmul.f32 %v1307_v47, %v303_v22  ;;  %s1446_s15 = scalar_lea.hbm %s1547_s11, %s644_s18  ;;  %s830_s3 = scalar_lea.vmem %s829_s27, 2048 }
  0x79   : > { %v369_v49 = vadd.f32 %v1303_v44, %v355_v39  ;;  %v466_v55 = vmul.f32 %v1280_v28, %v305_v40  ;;  %v455_v59 = vadd.f32 %v448_v52, %v437_v48  ;;  %v287_v62 = vsel %vm273_vm0, %v277_v56, 0.0  ;;  %p831_p5 = scmp.lt.s32.totalorder %s1440_s6, %s829_s27  ;;  %p832_p1 = scmp.lt.s32.totalorder %s830_s3, %s824_s30 }
  0x7a   : > { %v370_v58 = vadd.f32 %v1303_v44, %v356_v50  ;;  %v399_v61 = vadd.f32 %v392_v53, %v381_v51  ;;  %v317_v63 = vmul.f32 %v1249_v11, %v286_v37  ;;  %v329_v0 = vmul.f32 %v1251_v12, %v1262_v17 }
  0x7b   : > { %v479_v57 = vadd.f32 %v472_v45, %v369_v49  ;;  %v473_v3 = vadd.f32 %v466_v55, %v455_v59  ;;  %v306_v4 = vsel %vm292_vm1, %v296_v60, 0.0  ;;  %v349_v5 = vmul.f32 %v1257_v15, %v305_v40  ;;  %p833_p6 = por %p832_p1, %p831_p5 }
  0x7c   : > { %v382_v7 = vmul.f32 %v1298_v42, %v285_v19  ;;  %v417_v8 = vadd.f32 %v410_v54, %v399_v61  ;;  %v337_v9 = vadd.f32 %v329_v0, %v317_v63  ;;  %v393_v10 = vmul.f32 %v1305_v46, %v1242_v6  ;;  %v1381_v0 = vld [vmem:[%s1221_s19 + $0x30] sm:$0xff] }
  0x7d   : > { %487 = vst [vmem:[%s1330_s26] sm:$0xff] %v479_v57  ;;  %v411_v13 = vmul.f32 %v1307_v47, %v304_v23  ;;  %v438_v14 = vmul.f32 %v1259_v16, %v287_v62  ;;  %v449_v18 = vmul.f32 %v1269_v21, %v1301_v43  ;;  %v467_v20 = vmul.f32 %v1280_v28, %v306_v4  ;;  %p834_p2 = pnand %p833_p6, %p827_p12 }
  0x7e   : > { %v278_v22 = vrot.slane %v1326_v2, 7  ;;  %v425_v24 = vadd.f32 %v417_v8, %v370_v58  ;;  %v357_v25 = vadd.f32 %v349_v5, %v337_v9  ;;  %v400_v19 = vadd.f32 %v393_v10, %v382_v7 }
  0x7f   : > { %v297_v26 = vrot.slane %v1326_v2, 1  ;;  %v456_v27 = vadd.f32 %v449_v18, %v438_v14  ;;  %v318_v23 = vmul.f32 %v1249_v11, %v287_v62  ;;  %v330_v29 = vmul.f32 %v1251_v12, %v1301_v43 }
  0x80   : > { %v288_v6 = vsel %vm273_vm0, %v278_v22, 0.0  ;;  %v480_v30 = vadd.f32 %v473_v3, %v425_v24  ;;  %v371_v31 = vadd.f32 %v1303_v44, %v357_v25  ;;  %v418_v32 = vadd.f32 %v411_v13, %v400_v19 }
  0x81   : > { %v307_v33 = vsel %vm292_vm1, %v297_v26, 0.0  ;;  %v474_v35 = vadd.f32 %v467_v20, %v456_v27  ;;  %v338_v36 = vadd.f32 %v330_v29, %v318_v23  ;;  %v350_v38 = vmul.f32 %v1257_v15, %v306_v4  ;;  %v266_v29 = vld [vmem:[%s1221_s19 + $0x38] sm:$0xff] }
  0x82   : > { %v383_v39 = vmul.f32 %v1298_v42, %v286_v37  ;;  %488 = vst [vmem:[%s1330_s26 + $0x8] sm:$0xff] %v480_v30  ;;  %v426_v41 = vadd.f32 %v418_v32, %v371_v31  ;;  %v394_v45 = vmul.f32 %v1305_v46, %v1262_v17  ;;  %v412_v48 = vmul.f32 %v1307_v47, %v305_v40 }
  0x83   : > { %v439_v49 = vmul.f32 %v1259_v16, %v288_v6  ;;  %v358_v50 = vadd.f32 %v350_v38, %v338_v36  ;;  %v450_v51 = vmul.f32 %v1269_v21, %v1326_v2  ;;  %v468_v52 = vmul.f32 %v1280_v28, %v307_v33 }
  0x84   : > { %v279_v53 = vrot.slane %v1355_v34, 7  ;;  %v481_v37 = vadd.f32 %v474_v35, %v426_v41  ;;  %v401_v54 = vadd.f32 %v394_v45, %v383_v39  ;;  %v298_v55 = vrot.slane %v1355_v34, 1 }
  0x85   : > { %v319_v56 = vmul.f32 %v1249_v11, %v288_v6  ;;  %v372_v17 = vadd.f32 %v1303_v44, %v358_v50  ;;  %v457_v40 = vadd.f32 %v450_v51, %v439_v49  ;;  %v331_v58 = vmul.f32 %v1251_v12, %v1326_v2 }
  0x86   : > { %v289_v57 = vsel %vm273_vm0, %v279_v53, 0.0  ;;  %489 = vst [vmem:[%s1330_s26 + $0x10] sm:$0xff] %v481_v37  ;;  %v419_v59 = vadd.f32 %v412_v48, %v401_v54  ;;  %v308_v60 = vsel %vm292_vm1, %v298_v55, 0.0  ;;  %v351_v61 = vmul.f32 %v1257_v15, %v307_v33 }
  0x87   : > { %v384_v63 = vmul.f32 %v1298_v42, %v287_v62  ;;  %v475_v3 = vadd.f32 %v468_v52, %v457_v40  ;;  %v339_v5 = vadd.f32 %v331_v58, %v319_v56  ;;  %v395_v7 = vmul.f32 %v1305_v46, %v1301_v43 }
  0x88   : > { %v413_v8 = vmul.f32 %v1307_v47, %v306_v4  ;;  %v427_v9 = vadd.f32 %v419_v59, %v372_v17  ;;  %v440_v10 = vmul.f32 %v1259_v16, %v289_v57  ;;  %v451_v13 = vmul.f32 %v1269_v21, %v1355_v34 }
  0x89   : > { %v469_v14 = vmul.f32 %v1280_v28, %v308_v60  ;;  %v359_v62 = vadd.f32 %v351_v61, %v339_v5  ;;  %v402_v18 = vadd.f32 %v395_v7, %v384_v63  ;;  %v280_v20 = vrot.slane %v1381_v0, 7 }
  0x8a   : > { %v299_v22 = vrot.slane %v1381_v0, 1  ;;  %v482_v24 = vadd.f32 %v475_v3, %v427_v9  ;;  %v458_v43 = vadd.f32 %v451_v13, %v440_v10  ;;  %v320_v4 = vmul.f32 %v1249_v11, %v289_v57 }
  0x8b   : > { %v332_v25 = vmul.f32 %v1251_v12, %v1355_v34  ;;  %v373_v19 = vadd.f32 %v1303_v44, %v359_v62  ;;  %v420_v26 = vadd.f32 %v413_v8, %v402_v18  ;;  %v290_v27 = vsel %vm273_vm0, %v280_v20, 0.0 }
  0x8c   : > { %v309_v23 = vsel %vm292_vm1, %v299_v22, 0.0  ;;  %490 = vst [vmem:[%s1330_s26 + $0x18] sm:$0xff] %v482_v24  ;;  %v476_v30 = vadd.f32 %v469_v14, %v458_v43  ;;  %v352_v32 = vmul.f32 %v1257_v15, %v308_v60  ;;  %v385_v35 = vmul.f32 %v1298_v42, %v288_v6 }
  0x8d   : > { %v340_v31 = vadd.f32 %v332_v25, %v320_v4  ;;  %v428_v36 = vadd.f32 %v420_v26, %v373_v19  ;;  %v396_v38 = vmul.f32 %v1305_v46, %v1326_v2  ;;  %v414_v39 = vmul.f32 %v1307_v47, %v307_v33 }
  0x8e   : > { %v441_v41 = vmul.f32 %v1259_v16, %v290_v27  ;;  %v452_v48 = vmul.f32 %v1269_v21, %v1381_v0  ;;  %v470_v49 = vmul.f32 %v1280_v28, %v309_v23  ;;  %v281_v50 = vrot.slane %v266_v29, 7 }
  0x8f   : > { %v360_v45 = vadd.f32 %v352_v32, %v340_v31  ;;  %v483_v51 = vadd.f32 %v476_v30, %v428_v36  ;;  %v403_v52 = vadd.f32 %v396_v38, %v385_v35  ;;  %v300_v6 = vrot.slane %v266_v29, 1 }
  0x90   : > { %v321_v53 = vmul.f32 %v1249_v11, %v290_v27  ;;  %v459_v2 = vadd.f32 %v452_v48, %v441_v41  ;;  %v291_v33 = vsel %vm273_vm0, %v281_v50, 0.0  ;;  %v333_v54 = vmul.f32 %v1251_v12, %v1381_v0 }
  0x91   : > { %v374_v37 = vadd.f32 %v1303_v44, %v360_v45  ;;  %491 = vst [vmem:[%s1330_s26 + $0x20] sm:$0xff] %v483_v51  ;;  %v421_v55 = vadd.f32 %v414_v39, %v403_v52  ;;  %v310_v56 = vsel %vm292_vm1, %v300_v6, 0.0  ;;  %v353_v17 = vmul.f32 %v1257_v15, %v309_v23 }
  0x92   : > { %v386_v40 = vmul.f32 %v1298_v42, %v289_v57  ;;  %v477_v58 = vadd.f32 %v470_v49, %v459_v2  ;;  %v341_v59 = vadd.f32 %v333_v54, %v321_v53  ;;  %v397_v61 = vmul.f32 %v1305_v46, %v1355_v34 }
  0x93   : > { %v415_v63 = vmul.f32 %v1307_v47, %v308_v60  ;;  %v429_v3 = vadd.f32 %v421_v55, %v374_v37  ;;  %v442_v5 = vmul.f32 %v1259_v16, %v291_v33  ;;  %v453_v1 = vmul.f32 %v1269_v21, %v266_v29 }
  0x94   : > { %v471_v7 = vmul.f32 %v1280_v28, %v310_v56  ;;  %v361_v8 = vadd.f32 %v353_v17, %v341_v59  ;;  %v404_v57 = vadd.f32 %v397_v61, %v386_v40  ;;  %v322_v9 = vmul.f32 %v1249_v11, %v291_v33 }
  0x95   : > { %v334_v10 = vmul.f32 %v1251_v12, %v266_v29  ;;  %v484_v13 = vadd.f32 %v477_v58, %v429_v3  ;;  %v460_v34 = vadd.f32 %v453_v1, %v442_v5  ;;  %v354_v60 = vmul.f32 %v1257_v15, %v310_v56 }
  0x96   : > { %v387_v14 = vmul.f32 %v1298_v42, %v290_v27  ;;  %v375_v16 = vadd.f32 %v1303_v44, %v361_v8  ;;  %v422_v62 = vadd.f32 %v415_v63, %v404_v57  ;;  %v398_v28 = vmul.f32 %v1305_v46, %v1381_v0 }
  0x97   : > { %v342_v21 = vadd.f32 %v334_v10, %v322_v9  ;;  %492 = vst [vmem:[%s1330_s26 + $0x28] sm:$0xff] %v484_v13  ;;  %v478_v11 = vadd.f32 %v471_v7, %v460_v34  ;;  %v416_v12 = vmul.f32 %v1307_v47, %v309_v23 }
  0x98   : > { %v430_v15 = vadd.f32 %v422_v62, %v375_v16  ;;  %v405_v42 = vadd.f32 %v398_v28, %v387_v14 }
  0x99   : > { %v362_v18 = vadd.f32 %v354_v60, %v342_v21 }
  0x9a   : > { %v485_v20 = vadd.f32 %v478_v11, %v430_v15  ;;  %v423_v0 = vadd.f32 %v416_v12, %v405_v42 }
  0x9b   : > { %v376_v46 = vadd.f32 %v1303_v44, %v362_v18 }
  0x9c   : > { %493 = vst [vmem:[%s1330_s26 + $0x30] sm:$0xff] %v485_v20 }
  0x9d   : > { %v431_v47 = vadd.f32 %v423_v0, %v376_v46 }
  0x9f   : > { %494 = vst [vmem:[%s1330_s26 + $0x38] sm:$0xff] %v431_v47 }
  0xa0   : > { %837 = shalt.err (!%p834_p2)
}
  0xa1   : > { %s838_s28 = scalar_lea.hbm %s1446_s15, 1024  ;;  %s842_s23 = scalar_lea.hbm %s1547_s11, 4096 }
  0xa2   : > { %p839_p8 = scmp.ne.s32.totalorder %s1446_s15, %s838_s28  ;;  %p843_p10 = scmp.lt.u32.totalorder %s1446_s15, %s1547_s11 }
  0xa3   : > { %p844_p11 = scmp.lt.u32.totalorder %s842_s23, %s838_s28  ;;  %p846_p3 = scmp.lt.u32.totalorder %s838_s28, %s1446_s15 }
  0xa4   : > { %p840_p13 = pnand %p839_p8, %p1548_p7 }
  0xa5   : > { %p845_p0 = por %p844_p11, %p843_p10 }
  0xa6   : > { %p841_p4 = pneg %p840_p13 }
  0xa7   : > { %p847_p9 = por %p846_p3, %p845_p0 }
  0xa9   : > { %p848_p12 = pnand %p847_p9, %p841_p4 }
  0xab   : > { %851 = shalt.err (!%p848_p12)
}
  0xac   : > { %s960_s24 = smov 128   ;;  %s961_s19 = smov 256  }
  0xad   : > { %s962_s30 = smov 8  }
  0xae   : > { %653 = dma.vmem_to_hbm [thread:$0]  (%p1548_p7), %s1440_s6, 1024, %s1446_s15, %s496_s12, %s960_s24, %s961_s19, %s962_s30  }
  0xaf PF: > { %s1549_s4 = sld [smem:[#allocation11_spill]]  ;;  %p667_p5 = scmp.ge.s32.totalorder %s950_s22, 2 }
  0xb0   : > { %p1550_p1 = scmp.ne.s32.totalorder %s1534_s8, 0 }
  0xb2   : > { %p663_p6 = pnand %p667_p5, %p1550_p1 }
  0xb5   : > { %s525_s27 = sand.u32 1, %s1549_s4  }
  0xb6   : > { %s526_s3 = scalar_lea.sflag [#allocation4], %s525_s27 }
  0xb7   : > { %905 = dma.done.wait (!%p663_p6), %s526_s3, 1024  }
  0xb8   : > { %907 = vsyncadd (!%p663_p6), %s526_s3, 4294966272  ;;  %s22_s22 = sadd.s32 1, %s950_s22   ;;  %s1551_s7 = sld [smem:[#allocation13_spill]] }
  0xb9   : > { %p19_p2 = scmp.ge.s32.totalorder %s22_s22, 6   ;;  %s1552_s25 = sld [smem:[#allocation14_spill]] }
  0xba   : > { %s1553_s12 = smov %s914_s13  ;;  %s1554_s13 = smov %s918_s14 }
  0xbb   : > { %s1555_s14 = smov %s1156_s10  ;;  %s1556_s15 = smov %s926_s16 }
  0xbc   : > { %s1557_s16 = smov %s930_s17  ;;  %s1558_s17 = smov %s1093_s9 }
  0xbd   : > { %s1559_s18 = smov %s942_s20  ;;  %s1560_s19 = smov %s946_s21 }
  0xbe   : > { %s1561_s20 = smov %s1551_s7  ;;  %21 = sbr.rel (!%p19_p2) target bundleno = 13 (0xd), region = 93 }
  0xbf   : > { %s1562_s21 = smov %s1552_s25 }
  0xc5   :  { %531 = vsyncpa [#allocation3], 1 }
  0xc6   :  { %533 = vsyncpa [#allocation3 + $0x1], 1 }
  0xc7   :  { %534 = vsyncpa [#allocation6], 1 }
  0xc8   :  { %536 = vsyncpa [#allocation6 + $0x1], 1 }
  0xc9   :  { %537 = vsyncpa [#allocation4], 1 }
  0xca   :  { %539 = vsyncpa [#allocation4 + $0x1], 1 }

</bundles_post_ra>
